<compile_context>
chip_gen: v6e
topology: v6e:2x2x1
jax: 0.10.0
libtpu: 0.0.40
codegen_flags: <defaults>
</compile_context>

<pallas_src>
import functools

import jax
import jax.numpy as jnp
from jax.experimental import pallas as pl
from jax.experimental.pallas import tpu as pltpu


# ------------------------------------------------------------------------- kernels


def _softmax_kernel(inv_ref, x_ref, o_ref):
    """Natural-layout tile: (TM, C), reduction over the lane axis.

    inv_ref : (1,) f32 in SMEM -- 1 / sum_j exp(x[0,j] - max_j x[0,:]) (precomputed).
    x_ref   : (TM, C) input tile in VMEM.
    o_ref   : (TM, C) output tile in VMEM.
    """
    x = x_ref[...].astype(jnp.float32)
    m = jnp.max(x, axis=1, keepdims=True)          # per-row max (XLU cross-lane reduce)
    e = jnp.exp(x - m)                             # EUP exp
    # Single scalar multiply (reciprocal computed once in the wrapper), not a divide.
    o_ref[...] = (e * inv_ref[0]).astype(o_ref.dtype)


def _softmax_kernel_packed(inv_ref, x_ref, o_ref, *, c: int):
    """Lane-packed tile: (TM, 128) holding 128//c logical rows per vreg row.

    The per-logical-row max is a segmented max over aligned c-lane groups, computed
    with a symmetric doubling butterfly: at each step every lane takes the max of its
    in-segment neighbours at distance +/- s (s = 1, 2, 4, ...).  Out-of-segment
    sources are detected by rolling the (1, 128) segment-id row with the *same* roll
    op and comparing, so correctness does not depend on pltpu.roll's shift-direction
    convention.
    """
    x = x_ref[...].astype(jnp.float32)                                  # (TM, 128)
    n_lanes = x.shape[-1]                                               # 128
    lane = jax.lax.broadcasted_iota(jnp.int32, (1, n_lanes), 1)
    seg = (lane // c).astype(jnp.float32)                               # segment id per lane

    m = x
    s = 1
    while s < c:                                   # ceil(log2(c)) unrolled steps
        for shift in (s, n_lanes - s):             # +s and -s neighbours (either convention)
            vals = pltpu.roll(m, shift=shift, axis=1)                   # full-tile XLU roll
            segs = pltpu.roll(seg, shift=shift, axis=1)                 # (1, 128) -> cheap
            same = segs == seg                                          # source in same segment?
            m = jnp.maximum(m, jnp.where(same, vals, jnp.float32(-jnp.inf)))
        s *= 2

    e = jnp.exp(x - m)                             # EUP exp, fully lane-dense
    o_ref[...] = (e * inv_ref[0]).astype(o_ref.dtype)


# -------------------------------------------------------------------- tile planning


def _vmem_capacity_bytes() -> int:
    """Physical VMEM per TensorCore, with a conservative (v7x-sized) fallback."""
    try:
        cap = getattr(pltpu.get_tpu_info(), "vmem_capacity_bytes", None)
        if cap:
            return int(cap)
    except Exception:  # best-effort query only
        pass
    return 64 * 1024 * 1024


def _tile_plan(rows: int, lane_width: int, itemsize: int) -> tuple[int, int]:
    """Choose (block_rows, vmem_limit_bytes) for a (rows, lane_width) blocked view.

    Accounts for lane padding (the lane axis rounds up to 128 in VMEM), the input
    dtype, double buffering of both the input and output blocks, dtype-aware sublane
    alignment, and guarantees >= 2 grid steps whenever the rows can be split so the
    'parallel' grid axis can use both TensorCores on v7x.
    """
    lanes_padded = -(-lane_width // 128) * 128
    sub = max(8, 32 // max(itemsize, 1))           # 8 (f32), 16 (bf16), 32 (int8/fp8)
    cap = _vmem_capacity_bytes()

    budget = cap // 2                              # block buffers only; rest is headroom
    per_row = 4 * lanes_padded * itemsize          # 2 input bufs + 2 output bufs per row
    tm = max(sub, budget // per_row)

    if tm >= rows:
        if rows >= 2 * sub:
            half = -(-rows // 2)                   # cdiv(rows, 2)
            tm = -(-half // sub) * sub             # round up to sublane alignment -> grid == 2
        else:
            tm = rows                              # too small to split; single full block
    else:
        tm = max(sub, (tm // sub) * sub)

    footprint = 4 * tm * lanes_padded * itemsize   # corrected, lane-padded footprint
    ceiling = min(100 << 20, (3 * cap) // 4)       # <= 3/4 physical, <= ~100 MiB
    vmem_limit = min(ceiling, max(int(1.5 * footprint) + (4 << 20), 32 << 20))
    return tm, vmem_limit


# ------------------------------------------------------------------------- wrapper


def softmax(x: jax.Array, *, block_rows: int | None = None) -> jax.Array:
    """Pallas TPU implementation of the Softmax module's forward pass.

    x: (N, C); reduction over dim 1.  NOTE the module's `[0]` quirk: every row is
    divided by ROW 0's exp-sum (rows 1..N-1 are not individually normalized).
    """
    assert x.ndim == 2, "layout: (batch, features); reduction over dim 1"
    n, c = x.shape
    itemsize = x.dtype.itemsize

    # ---- Break the cross-row dependency introduced by the `[0]` quirk ------------
    # Compute row 0's exp-sum reciprocal in plain JAX (touches only C elements), so
    # every batch tile is independent and the grid axis can run fully in parallel.
    row0 = x[0].astype(jnp.float32)
    s0 = jnp.sum(jnp.exp(row0 - jnp.max(row0)))
    inv0 = (1.0 / s0).reshape(1).astype(jnp.float32)        # (1,) f32 -> SMEM

    # ---- Lane packing: view (N, C) as (N*C/128, 128) when C evenly divides 128 ---
    pack = 128 // c if (c < 128 and 128 % c == 0) else 0
    packed = bool(pack) and n % pack == 0 and (n // pack) >= 8
    if packed:
        rows, width = n // pack, 128
        x_view = x.reshape(rows, width)                     # free: contiguous row-major
        kernel = functools.partial(_softmax_kernel_packed, c=c)
    else:
        rows, width = n, c                                  # natural layout (tiny N or odd C)
        x_view = x
        kernel = _softmax_kernel

    tm, vmem_limit = _tile_plan(rows, width, itemsize)
    if block_rows is not None:
        tm = block_rows
    grid = (pl.cdiv(rows, tm),)
    # Padded rows of a partial last block are read but never stored (masked) -- harmless.

    out = pl.pallas_call(
        kernel,
        out_shape=jax.ShapeDtypeStruct((rows, width), x.dtype),
        grid=grid,
        in_specs=[
            pl.BlockSpec(memory_space=pltpu.SMEM),          # inv0 scalar (whole array)
            pl.BlockSpec((tm, width), lambda i: (i, 0)),    # input row tile
        ],
        out_specs=pl.BlockSpec((tm, width), lambda i: (i, 0)),
        compiler_params=pltpu.CompilerParams(
            dimension_semantics=("parallel",),              # megacore-shardable on v7x
            vmem_limit_bytes=vmem_limit,
        ),
        cost_estimate=pl.CostEstimate(
            flops=4 * n * c,
            transcendentals=n * c,
            bytes_accessed=2 * n * c * itemsize,
        ),
    )(inv0, x_view)

    return out.reshape(n, c) if packed else out


def _reference(x: jax.Array) -> jax.Array:
    """Pure-JAX reference mirroring the PyTorch module line-by-line."""
    e = jnp.exp(x - jnp.max(x, axis=1, keepdims=True))
    summ = jnp.sum(e, axis=1, keepdims=True)[0]   # shape (1,) -- row-0 sum, like torch `[0]`
    return e / summ


if __name__ == "__main__":
    key = jax.random.PRNGKey(0)
    k1, k2, k3 = jax.random.split(key, 3)

    tests = [
        jax.random.normal(k1, (8, 32), dtype=jnp.float32),    # tiny batch -> natural layout
        jax.random.normal(k2, (512, 32), dtype=jnp.float32),  # lane-packed path, 2-step grid
        jax.random.normal(k3, (16, 10), dtype=jnp.float32),   # MNIST class count (128 % 10 != 0)
    ]
    for x in tests:
        out = jax.block_until_ready(softmax(x))
        ref = _reference(x)
        assert out.shape == ref.shape and out.dtype == ref.dtype
        assert jnp.allclose(out, ref, atol=1e-5, rtol=1e-5), f"mismatch for shape {x.shape}"

    print("KERNEL_OK")
</pallas_src>

<mosaic_0001>
module attributes {stable_mosaic.version = 11 : i64} {
  func.func @_softmax_kernel(%arg0: i32, %arg1: memref<1xf32, #tpu.memory_space<smem>>, %arg2: memref<8x32xf32, #tpu.memory_space<vmem>>, %arg3: memref<8x32xf32, #tpu.memory_space<vmem>>) attributes {dimension_semantics = [#tpu.dimension_semantics<parallel>], iteration_bounds = array<i64: 1>, scalar_prefetch = 0 : i64, scratch_operands = 0 : i64, tpu.core_type = #tpu.core_type<tc>, window_params = [{transform_indices = @transform_0, window_bounds = array<i64: 1>}, {transform_indices = @transform_1, window_bounds = array<i64: 8, 32>}, {transform_indices = @transform_2, window_bounds = array<i64: 8, 32>}]} {
    %c0 = arith.constant 0 : index
    %c0_0 = arith.constant 0 : index
    %0 = vector.load %arg2[%c0, %c0_0] : memref<8x32xf32, #tpu.memory_space<vmem>>, vector<8x32xf32>
    %cst = arith.constant dense<0xFF800000> : vector<8xf32>
    %1 = vector.multi_reduction <maximumf>, %0, %cst [1] : vector<8x32xf32> to vector<8xf32>
    %2 = vector.shape_cast %1 : vector<8xf32> to vector<8x1xf32>
    %3 = vector.broadcast %2 : vector<8x1xf32> to vector<8x32xf32>
    %4 = arith.subf %0, %3 : vector<8x32xf32>
    %5 = math.exp %4 : vector<8x32xf32>
    %c0_1 = arith.constant 0 : index
    %6 = memref.load %arg1[%c0_1] : memref<1xf32, #tpu.memory_space<smem>>
    %7 = vector.broadcast %6 : f32 to vector<8x32xf32>
    %8 = arith.mulf %5, %7 : vector<8x32xf32>
    %c0_2 = arith.constant 0 : index
    %c0_3 = arith.constant 0 : index
    %9 = vector.load %arg3[%c0_2, %c0_3] : memref<8x32xf32, #tpu.memory_space<vmem>>, vector<8x32xf32>
    tpu.vector_store %arg3[%c0_2, %c0_3], %8 {strides = array<i32>} : memref<8x32xf32, #tpu.memory_space<vmem>>, vector<8x32xf32>,
    return
  }
  func.func @transform_0(%arg0: i32) -> i32 {
    %c0_i32 = arith.constant 0 : i32
    %c0_i32_0 = arith.constant 0 : i32
    return %c0_i32 : i32
  }
  func.func @transform_1(%arg0: i32) -> (i32, i32) {
    %c0_i32 = arith.constant 0 : i32
    %c0_i32_0 = arith.constant 0 : i32
    return %arg0, %c0_i32 : i32, i32
  }
  func.func @transform_2(%arg0: i32) -> (i32, i32) {
    %c0_i32 = arith.constant 0 : i32
    %c0_i32_0 = arith.constant 0 : i32
    return %arg0, %c0_i32 : i32, i32
  }
}

</mosaic_0001>

<bundles_post_ra>
// kernel: tpu_custom_call.1
= control target key start
LH: loop header
LB: loop body
LE: loop exit
PB: predicated region body
PF: predicated region fallthrough
CT: control target
= control target key end

     0   :  { %8 = vsyncpa [#allocation4], 0  ;;  %s126_s0 = inlined_call_operand.<no memory space> [shape: f32[1], index: 0, kind: input, shape index: {}]   ;;  %s127_s1 = inlined_call_operand.hbm [shape: f32[8,32], index: 1, kind: input, shape index: {}]   ;;  %s128_s2 = inlined_call_operand.hbm [shape: f32[8,32], index: 2, kind: output, shape index: {}]  }
   0x1   :  { %9 = vsyncpa [#allocation5], 0  ;;  %s100_s9 = smov [#allocation3]  }
   0x2   :  { %s18_s10 = sshll.u32 %s100_s9, 4  ;;  %s19_s10 = int_to_ptr.vmem [resolvable:$true] %s18_s10 }
   0x3   :  { %s64_s11 = scalar_lea.vmem %s19_s10, 128  ;;  %p69_p1 = scmp.lt.s32.totalorder %s19_s10, %s19_s10 }
   0x4   :  { %p65_p0 = scmp.ne.s32.totalorder %s19_s10, %s64_s11  ;;  %p70_p2 = scmp.lt.s32.totalorder %s64_s11, %s64_s11 }
   0x6   :  { %p71_p3 = por %p70_p2, %p69_p1 }
   0x8   :  { %p72_p4 = pnand %p71_p3, %p65_p0 }
   0xa   :  { %75 = shalt.err (!%p72_p4)
}
   0xb   :  { %21 = dma.hbm_to_vmem [thread:$0]  %s127_s1, 128, %s19_s10, [#allocation4]  }
   0xc   :  { %96 = dma.done.wait [#allocation4], 128  }
   0xd   :  { %97 = vsyncadd [#allocation4], 4294967168  ;;  %vm26_vm0 = vcmask 261120   ;;  %v25_v0 = vld [vmem:[#allocation3] sm:$0xff]  ;;  %v34_v5 = vstv %s126_s0  ;;  %s101_s16 = smov [#allocation6]  }
   0xe   :  { %v27_v1 = vsel %vm26_vm0, %v25_v0, -inf  ;;  %s43_s17 = sshll.u32 %s101_s16, 4  ;;  %s44_s17 = int_to_ptr.vmem [resolvable:$true] %s43_s17 }
   0xf   :  { %28 = vmax.xlane.f32.xlu0 %v27_v1  ;;  %s76_s1 = scalar_lea.vmem %s44_s17, 128  ;;  %p81_p6 = scmp.lt.s32.totalorder %s44_s17, %s44_s17 }
  0x10   :  { %p77_p5 = scmp.ne.s32.totalorder %s44_s17, %s76_s1  ;;  %p82_p7 = scmp.lt.s32.totalorder %s76_s1, %s76_s1 }
  0x12   :  { %p83_p8 = por %p82_p7, %p81_p6 }
  0x14   :  { %p84_p9 = pnand %p83_p8, %p77_p5 }
  0x98   :  { %v29_v2 = vpop.xlane.xlu0 %28 }
  0x99   :  { %v30_v3 = vsub.f32 %v25_v0, %v29_v2 }
  0x9b   :  { %v31_v4 = vmul.f32 1.442695, %v30_v3 }
  0x9d   :  { %54 = vpow2.f32 %v31_v4 }
  0xaa   :  { %v55_v6 = vpop.eup %54 }
  0xab   :  { %v35_v7 = vmul.f32 %v55_v6, %v34_v5 }
  0xad   :  { %36 = vst.msk [vmem:[#allocation6] sm:$0xff] %vm26_vm0, %v35_v7 }
  0xae   :  { %87 = shalt.err (!%p84_p9)
}
  0xaf   :  { %46 = dma.vmem_to_hbm [thread:$0]  %s44_s17, 128, %s128_s2, [#allocation5]  }
  0xb0   :  { %98 = dma.done.wait [#allocation5], 128  }
  0xb1   :  { %99 = vsyncadd [#allocation5], 4294967168 }
  0xb2   :  { %50 = vsyncpa [#allocation4], 1 }
  0xb3   :  { %51 = vsyncpa [#allocation5], 1 }

</bundles_post_ra>
